<compile_context>
chip_gen: v7x
topology: tpu7x:2x2x1
jax: 0.10.0
libtpu: 0.0.40
codegen_flags: <defaults>
</compile_context>

<pallas_src>
import jax
import jax.numpy as jnp
from jax.experimental import pallas as pl
from jax.experimental.pallas import tpu as pltpu

EPS = 1e-5  # nn.BatchNorm1d default


def _round_up(n, m):
    return ((n + m - 1) // m) * m


def _embedding_projection_kernel(x_ref, m_in_ref, b1_ref, m_out_ref, b2_ref, o_ref):
    # First projection: eval-mode BN and 1/inner_dim already folded into m_in / b1.
    h = jnp.dot(x_ref[...], m_in_ref[...], preferred_element_type=jnp.float32)
    h = h + b1_ref[...]
    # Dropout (eval mode) == identity.
    # Second projection: 1/tgt_dim already folded into m_out.
    y = jnp.dot(h.astype(m_out_ref.dtype), m_out_ref[...],
                preferred_element_type=jnp.float32)
    o_ref[...] = (y + b2_ref[...]).astype(o_ref.dtype)


def fold_params(params, compute_dtype=jnp.float32):
    """Fold eval-mode BN + 1/dim scales into the weights and pad feature dims to 128 lanes.

    Done once on the host side (outside the per-call hot path); numerically exact in eval mode.
    """
    M_in, M_out = params["M_in"], params["M_out"]
    src_dim, inner_dim = M_in.shape
    tgt_dim = M_out.shape[1]

    scale = params["bn_gamma"] * jax.lax.rsqrt(params["bn_running_var"] + EPS)
    m_in_f = M_in * (scale / inner_dim)[None, :]
    b1_f = (params["b1"] - params["bn_running_mean"]) * scale + params["bn_beta"]
    m_out_f = M_out / tgt_dim
    b2_f = params["b2"]

    # Zero-pad inner/tgt to multiples of 128 (lane-dense h and output; zero pads are exact).
    inner_p = _round_up(inner_dim, 128)
    tgt_p = _round_up(tgt_dim, 128)
    m_in_p = jnp.zeros((src_dim, inner_p), jnp.float32).at[:, :inner_dim].set(m_in_f)
    b1_p = jnp.zeros((1, inner_p), jnp.float32).at[0, :inner_dim].set(b1_f)
    m_out_p = jnp.zeros((inner_p, tgt_p), jnp.float32).at[:inner_dim, :tgt_dim].set(m_out_f)
    b2_p = jnp.zeros((1, tgt_p), jnp.float32).at[0, :tgt_dim].set(b2_f)

    return {
        "m_in": m_in_p.astype(compute_dtype),   # MXU operands in compute_dtype (bf16 on v6e/v7x)
        "b1": b1_p,                             # biases stay f32 (added after f32 accumulation)
        "m_out": m_out_p.astype(compute_dtype),
        "b2": b2_p,
        "tgt_dim": tgt_dim,
    }


def embedding_projection_forward(x, folded, *, tile_b=256):
    """x: (B, src_dim) f32.  folded: output of fold_params.  Returns (B, tgt_dim) f32."""
    B, src_dim = x.shape
    m_in, b1, m_out, b2 = folded["m_in"], folded["b1"], folded["m_out"], folded["b2"]
    inner_p = m_in.shape[1]
    tgt_p = m_out.shape[1]
    tgt_dim = folded["tgt_dim"]
    compute_dtype = m_in.dtype

    # Batch tile: up to 256 rows (>= MXU height), multiple of 8 sublanes.
    tile_b = min(tile_b, _round_up(B, 8))
    b_pad = _round_up(B, tile_b)
    x_p = x.astype(compute_dtype)
    if b_pad != B:
        x_p = jnp.pad(x_p, ((0, b_pad - B), (0, 0)))
    grid = (b_pad // tile_b,)

    itemsize = jnp.dtype(compute_dtype).itemsize
    flops = 2 * b_pad * (src_dim * inner_p + inner_p * tgt_p)
    bytes_accessed = (x_p.size * itemsize + m_in.size * itemsize + m_out.size * itemsize
                      + b1.size * 4 + b2.size * 4 + b_pad * tgt_p * 4)

    out = pl.pallas_call(
        _embedding_projection_kernel,
        out_shape=jax.ShapeDtypeStruct((b_pad, tgt_p), jnp.float32),
        grid=grid,
        in_specs=[
            pl.BlockSpec((tile_b, src_dim), lambda i: (i, 0)),   # x tile, pipelined over batch
            pl.BlockSpec((src_dim, inner_p), lambda i: (0, 0)),  # weights stay VMEM-resident
            pl.BlockSpec((1, inner_p), lambda i: (0, 0)),
            pl.BlockSpec((inner_p, tgt_p), lambda i: (0, 0)),
            pl.BlockSpec((1, tgt_p), lambda i: (0, 0)),
        ],
        out_specs=pl.BlockSpec((tile_b, tgt_p), lambda i: (i, 0)),
        compiler_params=pltpu.CompilerParams(
            dimension_semantics=("parallel",),      # batch axis: pipeline + megacore on v7x
            vmem_limit_bytes=64 * 1024 * 1024,      # v5e default scoped limit is only 16 MiB
        ),
        cost_estimate=pl.CostEstimate(flops=flops, transcendentals=0,
                                      bytes_accessed=bytes_accessed),
    )(x_p, m_in, b1, m_out, b2)

    return out[:B, :tgt_dim]


def init_params(key, src_dim, inner_dim, tgt_dim):
    k1, k2 = jax.random.split(key)
    return {
        "M_in": jax.random.normal(k1, (src_dim, inner_dim), dtype=jnp.float32),
        "M_out": jax.random.normal(k2, (inner_dim, tgt_dim), dtype=jnp.float32),
        "b1": jnp.zeros((inner_dim,), jnp.float32),
        "b2": jnp.zeros((tgt_dim,), jnp.float32),
        # BatchNorm1d defaults: weight=1, bias=0, running_mean=0, running_var=1
        "bn_gamma": jnp.ones((inner_dim,), jnp.float32),
        "bn_beta": jnp.zeros((inner_dim,), jnp.float32),
        "bn_running_mean": jnp.zeros((inner_dim,), jnp.float32),
        "bn_running_var": jnp.ones((inner_dim,), jnp.float32),
    }


def _reference_forward(x, params):
    inner_dim = params["M_in"].shape[1]
    tgt_dim = params["M_out"].shape[1]
    h = x @ params["M_in"] / inner_dim + params["b1"]
    h = (h - params["bn_running_mean"]) / jnp.sqrt(params["bn_running_var"] + EPS)
    h = h * params["bn_gamma"] + params["bn_beta"]
    y = h @ params["M_out"] / tgt_dim + params["b2"]
    return y


if __name__ == "__main__":
    key = jax.random.PRNGKey(0)
    kp, kx = jax.random.split(key)

    B, SRC, INNER, TGT = 8, 32, 64, 16
    params = init_params(kp, SRC, INNER, TGT)
    x = jax.random.normal(kx, (B, SRC), dtype=jnp.float32)

    ref = _reference_forward(x, params)

    # f32 operand path: tight correctness check against the pure-JAX reference.
    folded_f32 = fold_params(params, compute_dtype=jnp.float32)
    out = jax.block_until_ready(embedding_projection_forward(x, folded_f32))
    assert out.shape == (B, TGT), out.shape
    assert jnp.allclose(out, ref, atol=1e-4, rtol=1e-4), "f32 mismatch vs reference"

    # bf16 operand path (MXU-friendly on v6e/v7x, f32 accumulation): loose check.
    folded_bf16 = fold_params(params, compute_dtype=jnp.bfloat16)
    out_bf16 = jax.block_until_ready(embedding_projection_forward(x, folded_bf16))
    assert out_bf16.shape == (B, TGT), out_bf16.shape
    assert bool(jnp.all(jnp.isfinite(out_bf16)))
    assert jnp.allclose(out_bf16, ref, atol=5e-2, rtol=5e-2), "bf16 mismatch vs reference"

    print("KERNEL_OK")
</pallas_src>

<mosaic_0001>
module attributes {stable_mosaic.version = 11 : i64} {
  func.func @_embedding_projection_kernel(%arg0: i32, %arg1: memref<8x32xf32, #tpu.memory_space<vmem>>, %arg2: memref<32x128xf32, #tpu.memory_space<vmem>>, %arg3: memref<1x128xf32, #tpu.memory_space<vmem>>, %arg4: memref<128x128xf32, #tpu.memory_space<vmem>>, %arg5: memref<1x128xf32, #tpu.memory_space<vmem>>, %arg6: memref<8x128xf32, #tpu.memory_space<vmem>>) attributes {dimension_semantics = [#tpu.dimension_semantics<parallel>], iteration_bounds = array<i64: 1>, scalar_prefetch = 0 : i64, scratch_operands = 0 : i64, tpu.core_type = #tpu.core_type<tc>, window_params = [{transform_indices = @transform_0, window_bounds = array<i64: 8, 32>}, {pipeline_mode = #tpu.pipeline_mode<synchronous>, transform_indices = @transform_1, window_bounds = array<i64: 32, 128>}, {pipeline_mode = #tpu.pipeline_mode<synchronous>, transform_indices = @transform_2, window_bounds = array<i64: 1, 128>}, {pipeline_mode = #tpu.pipeline_mode<synchronous>, transform_indices = @transform_3, window_bounds = array<i64: 128, 128>}, {pipeline_mode = #tpu.pipeline_mode<synchronous>, transform_indices = @transform_4, window_bounds = array<i64: 1, 128>}, {transform_indices = @transform_5, window_bounds = array<i64: 8, 128>}]} {
    %c0 = arith.constant 0 : index
    %c0_0 = arith.constant 0 : index
    %0 = vector.load %arg1[%c0, %c0_0] : memref<8x32xf32, #tpu.memory_space<vmem>>, vector<8x32xf32>
    %c0_1 = arith.constant 0 : index
    %c0_2 = arith.constant 0 : index
    %1 = vector.load %arg2[%c0_1, %c0_2] : memref<32x128xf32, #tpu.memory_space<vmem>>, vector<32x128xf32>
    %cst = arith.constant dense<0.000000e+00> : vector<8x128xf32>
    %2 = tpu.matmul %0, %1, %cst {dimension_numbers = #tpu.dot_dimension_numbers<[1], [0], [0], [1], [0, 0, 1, 1], [], []>} : vector<8x32xf32>, vector<32x128xf32>, vector<8x128xf32> -> vector<8x128xf32>
    %c0_3 = arith.constant 0 : index
    %c0_4 = arith.constant 0 : index
    %3 = vector.load %arg3[%c0_3, %c0_4] : memref<1x128xf32, #tpu.memory_space<vmem>>, vector<1x128xf32>
    %4 = vector.broadcast %3 : vector<1x128xf32> to vector<8x128xf32>
    %5 = arith.addf %2, %4 : vector<8x128xf32>
    %c0_5 = arith.constant 0 : index
    %c0_6 = arith.constant 0 : index
    %6 = vector.load %arg4[%c0_5, %c0_6] : memref<128x128xf32, #tpu.memory_space<vmem>>, vector<128x128xf32>
    %cst_7 = arith.constant dense<0.000000e+00> : vector<8x128xf32>
    %7 = tpu.matmul %5, %6, %cst_7 {dimension_numbers = #tpu.dot_dimension_numbers<[1], [0], [0], [1], [0, 0, 1, 1], [], []>} : vector<8x128xf32>, vector<128x128xf32>, vector<8x128xf32> -> vector<8x128xf32>
    %c0_8 = arith.constant 0 : index
    %c0_9 = arith.constant 0 : index
    %8 = vector.load %arg5[%c0_8, %c0_9] : memref<1x128xf32, #tpu.memory_space<vmem>>, vector<1x128xf32>
    %9 = vector.broadcast %8 : vector<1x128xf32> to vector<8x128xf32>
    %10 = arith.addf %7, %9 : vector<8x128xf32>
    %c0_10 = arith.constant 0 : index
    %c0_11 = arith.constant 0 : index
    %11 = vector.load %arg6[%c0_10, %c0_11] : memref<8x128xf32, #tpu.memory_space<vmem>>, vector<8x128xf32>
    tpu.vector_store %arg6[%c0_10, %c0_11], %10 {strides = array<i32>} : memref<8x128xf32, #tpu.memory_space<vmem>>, vector<8x128xf32>,
    return
  }
  func.func @transform_0(%arg0: i32) -> (i32, i32) {
    %c0_i32 = arith.constant 0 : i32
    %c0_i32_0 = arith.constant 0 : i32
    return %arg0, %c0_i32 : i32, i32
  }
  func.func @transform_1(%arg0: i32) -> (i32, i32) {
    %c0_i32 = arith.constant 0 : i32
    %c0_i32_0 = arith.constant 0 : i32
    %c0_i32_1 = arith.constant 0 : i32
    return %c0_i32, %c0_i32_0 : i32, i32
  }
  func.func @transform_2(%arg0: i32) -> (i32, i32) {
    %c0_i32 = arith.constant 0 : i32
    %c0_i32_0 = arith.constant 0 : i32
    %c0_i32_1 = arith.constant 0 : i32
    return %c0_i32, %c0_i32_0 : i32, i32
  }
  func.func @transform_3(%arg0: i32) -> (i32, i32) {
    %c0_i32 = arith.constant 0 : i32
    %c0_i32_0 = arith.constant 0 : i32
    %c0_i32_1 = arith.constant 0 : i32
    return %c0_i32, %c0_i32_0 : i32, i32
  }
  func.func @transform_4(%arg0: i32) -> (i32, i32) {
    %c0_i32 = arith.constant 0 : i32
    %c0_i32_0 = arith.constant 0 : i32
    %c0_i32_1 = arith.constant 0 : i32
    return %c0_i32, %c0_i32_0 : i32, i32
  }
  func.func @transform_5(%arg0: i32) -> (i32, i32) {
    %c0_i32 = arith.constant 0 : i32
    %c0_i32_0 = arith.constant 0 : i32
    return %arg0, %c0_i32 : i32, i32
  }
}

</mosaic_0001>

<bundles_post_ra>
// kernel: tpu_custom_call.1
= control target key start
LH: loop header
LB: loop body
LE: loop exit
PB: predicated region body
PF: predicated region fallthrough
CT: control target
= control target key end

     0   :  { %10 = vsyncpa [#allocation3], 0  ;;  %s645_s0 = inlined_call_operand.hbm [shape: f32[8,32], index: 0, kind: input, shape index: {}]   ;;  %s646_s1 = inlined_call_operand.hbm [shape: f32[32,128], index: 1, kind: input, shape index: {}]   ;;  %s647_s2 = inlined_call_operand.hbm [shape: f32[1,128], index: 2, kind: input, shape index: {}]   ;;  %s648_s3 = inlined_call_operand.hbm [shape: f32[128,128], index: 3, kind: input, shape index: {}]   ;;  %s649_s4 = inlined_call_operand.hbm [shape: f32[1,128], index: 4, kind: input, shape index: {}]   ;;  %s650_s5 = inlined_call_operand.hbm [shape: f32[8,128], index: 5, kind: output, shape index: {}]  }
   0x1   :  { %11 = vsyncpa [#allocation6], 0 }
   0x2   :  { %12 = vsyncpa [#allocation9], 0 }
   0x3   :  { %13 = vsyncpa [#allocation4], 0  ;;  %s532_s18 = smov [#allocation5]   ;;  %s392_s22 = scalar_lea.hbm %s646_s1, 512 }
   0x4   :  { %s29_s19 = sshll.u32 %s532_s18, 4  ;;  %p393_p0 = scmp.ne.s32.totalorder %s646_s1, %s392_s22  ;;  %s30_s19 = int_to_ptr.vmem [resolvable:$true] %s29_s19 }
   0x5   :  { %p396_p1 = scmp.lt.u32.totalorder %s392_s22, %s646_s1 }
   0x7   :  { %p398_p2 = pnand %p396_p1, %p393_p0 }
   0x9   :  { %401 = shalt.err (!%p398_p2)
}
   0xa   :  { %s402_s27 = scalar_lea.vmem %s30_s19, 512  ;;  %p407_p4 = scmp.lt.s32.totalorder %s30_s19, %s30_s19 }
   0xb   :  { %p403_p3 = scmp.ne.s32.totalorder %s30_s19, %s402_s27  ;;  %p408_p5 = scmp.lt.s32.totalorder %s402_s27, %s402_s27 }
   0xd   :  { %p409_p6 = por %p408_p5, %p407_p4 }
   0xf   :  { %p410_p7 = pnand %p409_p6, %p403_p3 }
  0x11   :  { %413 = shalt.err (!%p410_p7)
}
  0x12   :  { %s533_s28 = smov 128   ;;  %s534_s29 = smov 8  }
  0x13   :  { %35 = dma.hbm_to_vmem [thread:$0]  %s646_s1, 512, %s30_s19, [#allocation6], %s533_s28, %s533_s28, %s534_s29  }
  0x14   :  { %s535_s7 = smov [#allocation8]   ;;  %s536_s9 = smov [#allocation2]  }
  0x15   :  { %s51_s8 = sshll.u32 %s535_s7, 4  ;;  %s20_s10 = sshll.u32 %s536_s9, 4  ;;  %s52_s8 = int_to_ptr.vmem [resolvable:$true] %s51_s8  ;;  %s21_s10 = int_to_ptr.vmem [resolvable:$true] %s20_s10 }
  0x16   :  { %s414_s13 = scalar_lea.hbm %s648_s3, 2048 }
  0x17   :  { %p415_p8 = scmp.ne.s32.totalorder %s648_s3, %s414_s13  ;;  %p418_p9 = scmp.lt.u32.totalorder %s414_s13, %s648_s3 }
  0x19   :  { %p420_p10 = pnand %p418_p9, %p415_p8 }
  0x1b   :  { %423 = shalt.err (!%p420_p10)
}
  0x1c   :  { %s424_s1 = scalar_lea.vmem %s52_s8, 2048  ;;  %p429_p12 = scmp.lt.s32.totalorder %s52_s8, %s52_s8 }
  0x1d   :  { %p425_p11 = scmp.ne.s32.totalorder %s52_s8, %s424_s1  ;;  %p430_p13 = scmp.lt.s32.totalorder %s424_s1, %s424_s1 }
  0x1f   :  { %p431_p0 = por %p430_p13, %p429_p12 }
  0x21   :  { %p432_p1 = pnand %p431_p0, %p425_p11 }
  0x23   :  { %435 = shalt.err (!%p432_p1)
}
  0x24   :  { %57 = dma.hbm_to_vmem [thread:$0]  %s648_s3, 2048, %s52_s8, [#allocation9], %s533_s28, %s533_s28, %s534_s29  }
  0x25   :  { %s436_s22 = scalar_lea.hbm %s645_s0, 128 }
  0x26   :  { %p437_p2 = scmp.ne.s32.totalorder %s645_s0, %s436_s22  ;;  %p440_p3 = scmp.lt.u32.totalorder %s436_s22, %s645_s0 }
  0x28   :  { %p442_p4 = pnand %p440_p3, %p437_p2 }
  0x2a   :  { %445 = shalt.err (!%p442_p4)
}
  0x2b   :  { %s446_s27 = scalar_lea.vmem %s21_s10, 128  ;;  %p451_p6 = scmp.lt.s32.totalorder %s21_s10, %s21_s10 }
  0x2c   :  { %p447_p5 = scmp.ne.s32.totalorder %s21_s10, %s446_s27  ;;  %p452_p7 = scmp.lt.s32.totalorder %s446_s27, %s446_s27 }
  0x2e   :  { %p453_p8 = por %p452_p7, %p451_p6 }
  0x30   :  { %p454_p9 = pnand %p453_p8, %p447_p5 }
  0x32   :  { %457 = shalt.err (!%p454_p9)
}
  0x33   :  { %23 = dma.hbm_to_vmem [thread:$0]  %s645_s0, 128, %s21_s10, [#allocation3]  }
  0x34   :  { %s537_s29 = smov [#allocation7]   ;;  %s538_s6 = smov [#allocation10]  }
  0x35   :  { %s42_s30 = sshll.u32 %s537_s29, 4  ;;  %s64_s7 = sshll.u32 %s538_s6, 4  ;;  %s43_s30 = int_to_ptr.vmem [resolvable:$true] %s42_s30  ;;  %s65_s7 = int_to_ptr.vmem [resolvable:$true] %s64_s7 }
  0x36   :  { %s458_s11 = scalar_lea.hbm %s647_s2, 16 }
  0x37   :  { %p459_p10 = scmp.ne.s32.totalorder %s647_s2, %s458_s11  ;;  %p462_p11 = scmp.lt.u32.totalorder %s458_s11, %s647_s2 }
  0x39   :  { %p464_p12 = pnand %p462_p11, %p459_p10 }
  0x3b   :  { %467 = shalt.err (!%p464_p12)
}
  0x3c   :  { %s468_s0 = scalar_lea.vmem %s43_s30, 16  ;;  %s472_s10 = scalar_lea.vmem %s43_s30, 32 }
  0x3d   :  { %p469_p13 = scmp.ne.s32.totalorder %s43_s30, %s468_s0  ;;  %p473_p0 = scmp.lt.s32.totalorder %s43_s30, %s43_s30 }
  0x3e   :  { %p474_p1 = scmp.lt.s32.totalorder %s472_s10, %s468_s0 }
  0x40   :  { %p475_p2 = por %p474_p1, %p473_p0 }
  0x42   :  { %p476_p3 = pnand %p475_p2, %p469_p13 }
  0x44   :  { %479 = shalt.err (!%p476_p3)
}
  0x45   :  { %45 = dma.hbm_to_vmem [thread:$0]  %s647_s2, 16, %s43_s30, [#allocation6]  }
  0x46   :  { %s480_s19 = scalar_lea.hbm %s649_s4, 16 }
  0x47   :  { %p481_p4 = scmp.ne.s32.totalorder %s649_s4, %s480_s19  ;;  %p484_p5 = scmp.lt.u32.totalorder %s480_s19, %s649_s4 }
  0x49   :  { %p486_p6 = pnand %p484_p5, %p481_p4 }
  0x4b   :  { %489 = shalt.err (!%p486_p6)
}
  0x4c   :  { %s490_s24 = scalar_lea.vmem %s65_s7, 16  ;;  %s494_s25 = scalar_lea.vmem %s65_s7, 32 }
  0x4d   :  { %p491_p7 = scmp.ne.s32.totalorder %s65_s7, %s490_s24  ;;  %p495_p8 = scmp.lt.s32.totalorder %s65_s7, %s65_s7 }
  0x4e   :  { %p496_p9 = scmp.lt.s32.totalorder %s494_s25, %s490_s24 }
  0x50   :  { %p497_p10 = por %p496_p9, %p495_p8 }
  0x52   :  { %p498_p11 = pnand %p497_p10, %p491_p7 }
  0x54   :  { %501 = shalt.err (!%p498_p11)
}
  0x55   :  { %67 = dma.hbm_to_vmem [thread:$0]  %s649_s4, 16, %s65_s7, [#allocation9]  }
  0x56   :  { %524 = dma.done.wait [#allocation3], 128  }
  0x57   :  { %525 = vsyncadd [#allocation3], 4294967168 }
  0x58   :  { %526 = dma.done.wait [#allocation6], 528  }
  0x59   :  { %527 = vsyncadd [#allocation6], 4294966768 }
  0x5a   :  { %528 = dma.done.wait [#allocation9], 2064  }
  0x5b   :  { %529 = vsyncadd [#allocation9], 4294965232  ;;  %v539_v0 = vmov 0.0|0.0   ;;  %vm540_vm0 = vmmov 0   ;;  %v541_v1 = vmov 0.0   ;;  %v84_v2 = vld [vmem:[#allocation5] sm:$0xff] }
  0x5c   :  { %351 = vmatprep.subr.bf16.mxu0 %v539_v0  ;;  %313 = vmatprep.mubr.msk.f32.mxu0 %vm540_vm0, %v541_v1  ;;  %v85_v3 = vld [vmem:[#allocation5 + $0x8] sm:$0xff]  ;;  %v86_v4 = vld [vmem:[#allocation5 + $0x10] sm:$0xff]  ;;  %v87_v6 = vld [vmem:[#allocation5 + $0x18] sm:$0xff]  ;;  %vm95_vm1 = vcmask 261120   ;;  %s542_s4 = smov [#allocation11]  }
  0x5d   :  { %357 = vmatprep.subr.bf16.mxu1 %v539_v0  ;;  %348 = vmatprep.mubr.msk.f32.mxu1 %vm540_vm0, %v541_v1  ;;  %v352_v5 = vpack.c.bf16 %v85_v3, %v84_v2  ;;  %v169_v7 = vld [vmem:[#allocation8] sm:$0xff]  ;;  %v170_v8 = vld [vmem:[#allocation8 + $0x8] sm:$0xff]  ;;  %v171_v9 = vld [vmem:[#allocation8 + $0x10] sm:$0xff]  ;;  %v355_v11 = vpack.c.bf16 %v87_v6, %v86_v4  ;;  %s269_s27 = sshll.u32 %s542_s4, 4  ;;  %s270_s27 = int_to_ptr.vmem [resolvable:$true] %s269_s27 }
  0x5e   :  { %v172_v10 = vld [vmem:[#allocation8 + $0x18] sm:$0xff]  ;;  %v358_v12 = vpack.c.bf16 %v170_v8, %v169_v7  ;;  %v173_v14 = vld [vmem:[#allocation8 + $0x20] sm:$0xff]  ;;  %v174_v15 = vld [vmem:[#allocation8 + $0x28] sm:$0xff]  ;;  %s502_s3 = scalar_lea.vmem %s270_s27, 128  ;;  %p507_p13 = scmp.lt.s32.totalorder %s270_s27, %s270_s27 }
  0x5f   :  { %353 = vmatpush3.bf16.msra.mxu0 %v352_v5  ;;  %v361_v13 = vpack.c.bf16 %v172_v10, %v171_v9  ;;  %v83_v16 = vld [vmem:[#allocation2] sm:$0xff]  ;;  %v364_v17 = vpack.c.bf16 %v174_v15, %v173_v14  ;;  %v177_v21 = vld [vmem:[#allocation8 + $0x40] sm:$0xff]  ;;  %v178_v22 = vld [vmem:[#allocation8 + $0x48] sm:$0xff]  ;;  %p503_p12 = scmp.ne.s32.totalorder %s270_s27, %s502_s3  ;;  %p508_p0 = scmp.lt.s32.totalorder %s502_s3, %s502_s3 }
  0x60   :  { %354 = vmatprep.subr.bf16.mxu0 %v539_v0  ;;  %359 = vmatpush3.bf16.msra.mxu1 %v358_v12  ;;  %v175_v18 = vld [vmem:[#allocation8 + $0x30] sm:$0xff]  ;;  %v176_v19 = vld [vmem:[#allocation8 + $0x38] sm:$0xff]  ;;  %v370_v23 = vpack.c.bf16 %v178_v22, %v177_v21  ;;  %v181_v27 = vld [vmem:[#allocation8 + $0x60] sm:$0xff] }
  0x61   :  { %360 = vmatprep.subr.bf16.mxu1 %v539_v0  ;;  %v367_v20 = vpack.c.bf16 %v176_v19, %v175_v18  ;;  %v179_v24 = vld [vmem:[#allocation8 + $0x50] sm:$0xff]  ;;  %v180_v25 = vld [vmem:[#allocation8 + $0x58] sm:$0xff]  ;;  %v182_v28 = vld [vmem:[#allocation8 + $0x68] sm:$0xff]  ;;  %p509_p1 = por %p508_p0, %p507_p13 }
  0x62   :  { %v373_v26 = vpack.c.bf16 %v180_v25, %v179_v24  ;;  %v376_v29 = vpack.c.bf16 %v182_v28, %v181_v27  ;;  %v183_v30 = vld [vmem:[#allocation8 + $0x70] sm:$0xff]  ;;  %v184_v31 = vld [vmem:[#allocation8 + $0x78] sm:$0xff]  ;;  %v282_v37 = vld [vmem:[#allocation10] ss:$0 sm:$0xff] }
  0x63   :  { %356 = vmatpush3.bf16.msra.mxu0 %v355_v11  ;;  %v379_v32 = vpack.c.bf16 %v184_v31, %v183_v30  ;;  %v280_v33 = vld [vmem:[#allocation7] ss:$0 sm:$0xff]  ;;  %p510_p2 = pnand %p509_p1, %p503_p12 }
  0x64   :  { %362 = vmatpush3.bf16.msra.mxu1 %v361_v13 }
  0x65   :  { %363 = vmatprep.subr.bf16.mxu1 %v539_v0 }
  0x66   :  { %314 = vmatmul.mubr.msk.f32.vlgmr.msra.gmra.mrb[0].mxu0 %vm95_vm1, %v83_v16 }
  0x68   :  { %365 = vmatpush3.bf16.msra.mxu1 %v364_v17 }
  0x69   :  { %366 = vmatprep.subr.bf16.mxu1 %v539_v0 }
  0x6c   :  { %368 = vmatpush3.bf16.msra.mxu1 %v367_v20 }
  0x6d   :  { %369 = vmatprep.subr.bf16.mxu1 %v539_v0 }
  0x70   :  { %371 = vmatpush3.bf16.msra.mxu1 %v370_v23 }
  0x71   :  { %372 = vmatprep.subr.bf16.mxu1 %v539_v0 }
  0x74   :  { %374 = vmatpush3.bf16.msra.mxu1 %v373_v26 }
  0x75   :  { %375 = vmatprep.subr.bf16.mxu1 %v539_v0 }
  0x78   :  { %377 = vmatpush3.bf16.msra.mxu1 %v376_v29 }
  0x79   :  { %378 = vmatprep.subr.bf16.mxu1 %v539_v0 }
  0x7c   :  { %380 = vmatpush3.bf16.msra.mxu1 %v379_v32 }
 0x139   :  { %v165_v34 = vpop.f32.mrb[0].mxu0 }
 0x13a   :  { %v166_v35 = vadd.f32 %v280_v33, %v165_v34  ;;  %v315_v36 = vpop.f32.mrb[1].mxu0 }
 0x13c   :  { %349 = vmatmul.mubr.f32.vlgmr.msra.gmra.mrb[0].mxu1 %v166_v35 }
 0x20f   :  { %v258_v38 = vpop.f32.mrb[0].mxu1 }
 0x210   :  { %v259_v39 = vadd.f32 %v282_v37, %v258_v38  ;;  %v350_v40 = vpop.f32.mrb[1].mxu1 }
 0x212   :  { %262 = vst [vmem:[#allocation11] sm:$0xff] %v259_v39 }
 0x213   :  { %513 = shalt.err (!%p510_p2)
}
 0x214   :  { %s514_s30 = scalar_lea.hbm %s650_s5, 128 }
 0x215   :  { %p515_p3 = scmp.ne.s32.totalorder %s650_s5, %s514_s30  ;;  %p518_p4 = scmp.lt.u32.totalorder %s514_s30, %s650_s5 }
 0x217   :  { %p520_p5 = pnand %p518_p4, %p515_p3 }
 0x219   :  { %523 = shalt.err (!%p520_p5)
}
 0x21a   :  { %272 = dma.vmem_to_hbm [thread:$0]  %s270_s27, 128, %s650_s5, [#allocation4]  }
 0x21b   :  { %530 = dma.done.wait [#allocation4], 128  }
 0x21c   :  { %531 = vsyncadd [#allocation4], 4294967168 }
 0x21d   :  { %276 = vsyncpa [#allocation3], 1 }
 0x21e   :  { %277 = vsyncpa [#allocation6], 1 }
 0x21f   :  { %278 = vsyncpa [#allocation9], 1 }
 0x220   :  { %279 = vsyncpa [#allocation4], 1 }

</bundles_post_ra>
